<compile_context>
chip_gen: v7x
topology: tpu7x:2x2x1
jax: 0.10.0
libtpu: 0.0.40
codegen_flags: <defaults>
</compile_context>

<pallas_src>
import jax
import jax.numpy as jnp
from jax import lax
from jax.experimental import pallas as pl
from jax.experimental.pallas import tpu as pltpu

f32 = jnp.float32
bf16 = jnp.bfloat16

_LANE = 512            # lane-dense last dim (multiple of 128)
_TILE_ROWS = 1024      # rows per grid step -> 2 MiB f32 tiles (amortizes ~0.35us/step)
_N_SPLITS = 2          # leading 'parallel' grid axis so both v7x TensorCores get work
_VMEM_LIMIT = 48 * 1024 * 1024   # explicit scoped-VMEM budget (safe on v5e/v6e/v7x)


def _sigmoid(x):
    # sigmoid via tanh: runs on the EUP (transcendental slot, otherwise idle here)
    # and saturates exactly to 0/1 for large |x| (important for padded elements).
    return 0.5 * (jnp.tanh(0.5 * x) + 1.0)


def _tile_plan(num_elems, max_tile_rows=_TILE_ROWS, n_splits=_N_SPLITS):
    """(rows_pad, tile_rows, tiles_per_split, n_splits) for a (rows, _LANE) layout."""
    rows = max(1, -(-num_elems // _LANE))
    if rows <= max_tile_rows:
        return rows, rows, 1, 1                    # single tile, full-array block
    n_tiles = -(-rows // max_tile_rows)
    if n_tiles % n_splits:                         # pad one tile so both cores get work
        n_tiles += n_splits - (n_tiles % n_splits)
    return n_tiles * max_tile_rows, max_tile_rows, n_tiles // n_splits, n_splits


def _pad_reshape(flat, fill, rows_pad):
    pad = rows_pad * _LANE - flat.shape[0]
    if pad > 0:
        flat = jnp.concatenate([flat, jnp.full((pad,), fill, flat.dtype)])
    return flat.reshape(rows_pad, _LANE)


# ----------------------------------------------------------------------------
# structure_loss
# ----------------------------------------------------------------------------
def _structure_kernel(pred_ref, mask_ref, ph_ref, pw_ref, wbce_ref, wiou_ref):
    x = pred_ref[...].astype(f32)     # (H, W)
    m_raw = mask_ref[...]
    m = m_raw.astype(f32)             # (H, W)

    # F.avg_pool2d(mask, 31, stride=1, padding=15), count_include_pad=True:
    # separable 31-wide box filter as two bf16 banded matmuls (MXU-native),
    # f32 accumulation; divisor applied in f32 afterwards.  Window sums of a
    # binary mask are small integers, so the bf16 cast of t1 is exact.
    t1 = jnp.dot(m_raw.astype(bf16), pw_ref[...], preferred_element_type=f32)
    pooled = jnp.dot(ph_ref[...], t1.astype(bf16), preferred_element_type=f32)
    pooled = pooled * (1.0 / 961.0)

    weit = 1.0 + 5.0 * jnp.abs(pooled - m)
    # binary_cross_entropy_with_logits, reduction='none' (stable form).
    wbce_map = jnp.maximum(x, 0.0) - x * m + jnp.log(1.0 + jnp.exp(-jnp.abs(x)))
    sig = _sigmoid(x)

    swbce = jnp.sum(weit * wbce_map)
    sweit = jnp.sum(weit)
    inter = jnp.sum(sig * m * weit)
    union = jnp.sum((sig + m) * weit)     # = sum(sig*weit) + sum(m*weit)

    wbce_ref[...] = jnp.full((1, 1, 1, 1), swbce / sweit, f32)
    wiou_ref[...] = jnp.full((1, 1, 1, 1),
                             1.0 - (inter + 1.0) / (union - inter + 1.0), f32)


def _band_spec(n):
    # Constant-index band matrix: single-buffer it (nothing to pipeline) to halve
    # its VMEM footprint; fall back to default buffering if unsupported.
    try:
        return pl.BlockSpec((n, n), lambda b, c: (0, 0), pipeline_mode=pl.Buffered(1))
    except (AttributeError, TypeError):
        return pl.BlockSpec((n, n), lambda b, c: (0, 0))


def structure_loss_stats(pred, mask):
    """Returns (wbce, wiou), each of shape (B, C), matching torch structure_loss."""
    B, C, H, W = pred.shape

    def band(n):  # band[i, j] = 1 if |i - j| <= 15 (31-wide box window), exact in bf16
        i = jnp.arange(n)[:, None]
        j = jnp.arange(n)[None, :]
        return (jnp.abs(i - j) <= 15).astype(bf16)

    ph = band(H)
    pw = band(W)

    io_spec = pl.BlockSpec((None, None, H, W), lambda b, c: (b, c, 0, 0))
    scal_spec = pl.BlockSpec((1, 1, 1, 1), lambda b, c: (b, c, 0, 0))

    # TODO(synk): for very small H*W, batching all C channels per grid step would
    # amortize the ~0.35us/step overhead further (skipped to keep one simple kernel).
    wbce, wiou = pl.pallas_call(
        _structure_kernel,
        out_shape=[jax.ShapeDtypeStruct((B, C, 1, 1), f32)] * 2,
        grid_spec=pltpu.PrefetchScalarGridSpec(
            num_scalar_prefetch=0,
            grid=(B, C),
            in_specs=[io_spec, io_spec, _band_spec(H), _band_spec(W)],
            out_specs=[scal_spec] * 2),
        compiler_params=pltpu.CompilerParams(
            dimension_semantics=("parallel", "parallel"),
            vmem_limit_bytes=_VMEM_LIMIT),
    )(pred, mask, ph, pw)

    return wbce.reshape(B, C), wiou.reshape(B, C)


# ----------------------------------------------------------------------------
# dice loss
# ----------------------------------------------------------------------------
def _dice_kernel(x_ref, t_ref, ssig_ref, stgt_ref, sint_ref):
    @pl.when(pl.program_id(1) == 0)
    def _():
        ssig_ref[...] = jnp.zeros_like(ssig_ref)
        stgt_ref[...] = jnp.zeros_like(stgt_ref)
        sint_ref[...] = jnp.zeros_like(sint_ref)

    s = _sigmoid(x_ref[...].astype(f32))
    t = t_ref[...].astype(f32)
    # lane-wise partial sums only; cross-lane reduction happens once on the host.
    ssig_ref[...] += jnp.sum(s, axis=0, keepdims=True)
    stgt_ref[...] += jnp.sum(t, axis=0, keepdims=True)
    sint_ref[...] += jnp.sum(s * t, axis=0, keepdims=True)


def dice_loss(inputs, target):
    rows_pad, tile_rows, tps, n_splits = _tile_plan(inputs.size)
    # Padding values: sigmoid(-1e9) == 0 exactly (tanh saturates) and target pad 0,
    # so padded elements contribute exactly zero to every sum.
    x2 = _pad_reshape(inputs.reshape(-1), -1e9, rows_pad)
    t2 = _pad_reshape(target.reshape(-1), 0.0, rows_pad)

    in_spec = pl.BlockSpec((tile_rows, _LANE), lambda s, r: (s * tps + r, 0))
    acc_spec = pl.BlockSpec((1, _LANE), lambda s, r: (s, 0))

    ssig, stgt, sint = pl.pallas_call(
        _dice_kernel,
        out_shape=[jax.ShapeDtypeStruct((n_splits, _LANE), f32)] * 3,
        grid_spec=pltpu.PrefetchScalarGridSpec(
            num_scalar_prefetch=0,
            grid=(n_splits, tps),
            in_specs=[in_spec, in_spec],
            out_specs=[acc_spec] * 3),
        compiler_params=pltpu.CompilerParams(
            dimension_semantics=("parallel", "arbitrary"),
            vmem_limit_bytes=_VMEM_LIMIT),
    )(x2, t2)

    ssig, stgt, sint = jnp.sum(ssig), jnp.sum(stgt), jnp.sum(sint)
    smooth = 1.0
    dice = (2.0 * sint + smooth) / ((ssig + stgt) * 1.0 + smooth)
    loss = 1.0 - dice
    # torch: if target.sum()==0 -> return 1.0 if sigmoid(inputs).sum()==0 else 0.0
    return jnp.where(stgt == 0.0, jnp.where(ssig == 0.0, 1.0, 0.0), loss)


# ----------------------------------------------------------------------------
# negloss (CornerNet modified focal loss)
# ----------------------------------------------------------------------------
def _make_negloss_kernel(num_levels):
    def kernel(pre_ref, gt_ref, pos_ref, neg_ref, npos_ref):
        @pl.when(pl.program_id(1) == 0)
        def _():
            pos_ref[...] = jnp.zeros_like(pos_ref)
            neg_ref[...] = jnp.zeros_like(neg_ref)
            npos_ref[...] = jnp.zeros_like(npos_ref)

        gt = gt_ref[...].astype(f32)              # (tile_rows, _LANE), loaded ONCE per tile
        pos_inds = (gt == 1.0).astype(f32)        # NaN compares false -> 0 (matches torch fixup)
        neg_inds = (gt < 1.0).astype(f32)
        q = 1.0 - gt
        neg_w = (q * q) * (q * q) * neg_inds      # shared across all prediction levels

        npos_ref[...] += jnp.sum(pos_inds, axis=0, keepdims=True)

        pos_part = jnp.zeros((1, _LANE), f32)
        neg_part = jnp.zeros((1, _LANE), f32)
        for n in range(num_levels):               # static unroll over the N levels
            p = jnp.clip(_sigmoid(pre_ref[n].astype(f32)), 0.0001, 1.0 - 0.0001)
            omp = 1.0 - p
            pos_l = jnp.log(p) * (omp * omp) * pos_inds
            neg_l = jnp.log(omp) * (p * p) * neg_w
            # clip() guarantees finite logs, so only NaN inputs need the torch-style fixup.
            pos_part += jnp.sum(jnp.where(jnp.isnan(pos_l), 0.0, pos_l),
                                axis=0, keepdims=True)
            neg_part += jnp.sum(jnp.where(jnp.isnan(neg_l), 0.0, neg_l),
                                axis=0, keepdims=True)
        pos_ref[...] += pos_part
        neg_ref[...] += neg_part
    return kernel


def neg_loss(pred, gt):
    """pred: (N, B, C, H, W) stack of predictions (iterated like `for pre in pred`);
       gt: (B, C, H, W)."""
    N = pred.shape[0]
    E = gt.size
    # Keep (N+1) double-buffered f32 tiles within ~24 MiB so v7x's 32 MiB scoped
    # default is never exceeded even for deep prediction stacks.
    max_tile = min(_TILE_ROWS, max(256, (3072 // (N + 1)) // 8 * 8))
    rows_pad, tile_rows, tps, n_splits = _tile_plan(E, max_tile_rows=max_tile)
    pad = rows_pad * _LANE - E

    pre2 = pred.reshape(N, E)
    gt1 = gt.reshape(E)
    if pad > 0:
        # gt pad = 2.0 -> pos_inds = neg_inds = 0; pred pad = 0 -> finite logs;
        # so every padded element contributes exactly zero to all three sums.
        pre2 = jnp.concatenate([pre2, jnp.zeros((N, pad), pre2.dtype)], axis=1)
        gt1 = jnp.concatenate([gt1, jnp.full((pad,), 2.0, gt1.dtype)])
    pre3 = pre2.reshape(N, rows_pad, _LANE)
    gt2 = gt1.reshape(rows_pad, _LANE)

    pre_spec = pl.BlockSpec((N, tile_rows, _LANE), lambda s, r: (0, s * tps + r, 0))
    gt_spec = pl.BlockSpec((tile_rows, _LANE), lambda s, r: (s * tps + r, 0))
    acc_spec = pl.BlockSpec((1, _LANE), lambda s, r: (s, 0))

    pos, neg, npos = pl.pallas_call(
        _make_negloss_kernel(N),
        out_shape=[jax.ShapeDtypeStruct((n_splits, _LANE), f32)] * 3,
        grid_spec=pltpu.PrefetchScalarGridSpec(
            num_scalar_prefetch=0,
            grid=(n_splits, tps),
            in_specs=[pre_spec, gt_spec],
            out_specs=[acc_spec] * 3),
        compiler_params=pltpu.CompilerParams(
            dimension_semantics=("parallel", "arbitrary"),
            vmem_limit_bytes=_VMEM_LIMIT),
    )(pre3, gt2)

    pos_s, neg_s, npos_s = jnp.sum(pos), jnp.sum(neg), jnp.sum(npos)
    npos_safe = jnp.where(npos_s == 0.0, 1.0, npos_s)
    # num_pos is identical for every level, so the torch per-level combination is
    # linear in (pos, neg) and can be applied once to the aggregated sums.
    loss = jnp.where(npos_s == 0.0, -neg_s, -(pos_s + neg_s) / npos_safe)
    return loss / N


# ----------------------------------------------------------------------------
# Module
# ----------------------------------------------------------------------------
class Lossncriterion:
    def __init__(self, mode, per_channel=False):
        # Deterministic parameter from __init__ (only used by boundary_forward in torch).
        self.laplacian = jnp.array([[[[-1, -1, -1], [-1, 8, -1], [-1, -1, -1]]]],
                                   dtype=jnp.float16)
        self.mode = mode
        self.per_channel = per_channel
        self.weight = [0.33, 0.33, 0.33]

    def __call__(self, inputs, target):
        return self.forward(inputs, target)

    def forward(self, inputs, target):
        if self.mode == 'structure_loss':
            wbce, wiou = structure_loss_stats(inputs, target)
            if self.per_channel:
                wbce_per_ch = jnp.mean(wbce, axis=0)
                wiou_per_ch = jnp.mean(wiou, axis=0)
                loss = (wbce_per_ch[0] * self.weight[0]
                        + wbce_per_ch[1] * self.weight[1]
                        + wbce_per_ch[2] * self.weight[2])
                loss = loss + (wiou_per_ch[0] * self.weight[0]
                               + wiou_per_ch[1] * self.weight[1]
                               + wiou_per_ch[2] * self.weight[2])
            else:
                loss = jnp.mean(wbce) + jnp.mean(wiou)
        elif self.mode == 'negloss':
            loss = neg_loss(inputs, target)
        elif self.mode == 'dice_loss':
            if self.per_channel:
                l0 = dice_loss(inputs[0], target[0])
                l1 = dice_loss(inputs[1], target[1])
                l2 = dice_loss(inputs[2], target[2])
                loss = l0 * self.weight[0] + l1 * self.weight[1] + l2 * self.weight[2]
            else:
                loss = dice_loss(inputs, target)
        return loss

    # TODO(synk): boundary_forward (3x3 laplacian conv + BCE) and dice_coefficient
    # are not part of forward() and are not implemented.


# ----------------------------------------------------------------------------
# Pure-JAX references (for sanity checking the kernels)
# ----------------------------------------------------------------------------
def _structure_loss_ref(pred, mask):
    pooled = lax.reduce_window(mask, 0.0, lax.add, (1, 1, 31, 31), (1, 1, 1, 1),
                               [(0, 0), (0, 0), (15, 15), (15, 15)]) / 961.0
    weit = 1.0 + 5.0 * jnp.abs(pooled - mask)
    wbce = jnp.maximum(pred, 0.0) - pred * mask + jnp.log1p(jnp.exp(-jnp.abs(pred)))
    wbce = (weit * wbce).sum((2, 3)) / weit.sum((2, 3))
    sig = jax.nn.sigmoid(pred)
    inter = (sig * mask * weit).sum((2, 3))
    union = (sig * weit).sum((2, 3)) + (mask * weit).sum((2, 3))
    wiou = 1.0 - (inter + 1.0) / (union - inter + 1.0)
    return wbce, wiou


def _neg_loss_ref(pred, gt):
    pos_inds = (gt == 1.0).astype(f32)
    neg_inds = (gt < 1.0).astype(f32)
    neg_w = (1.0 - gt) ** 4
    loss = 0.0
    for n in range(pred.shape[0]):
        p = jnp.clip(jax.nn.sigmoid(pred[n]), 1e-4, 1 - 1e-4)
        pos_l = jnp.sum(jnp.log(p) * (1 - p) ** 2 * pos_inds)
        neg_l = jnp.sum(jnp.log(1 - p) * p ** 2 * neg_w * neg_inds)
        npos = jnp.sum(pos_inds)
        loss = loss - jnp.where(npos == 0, neg_l,
                                (pos_l + neg_l) / jnp.where(npos == 0, 1.0, npos))
    return loss / pred.shape[0]


def _dice_loss_ref(x, t):
    s = jax.nn.sigmoid(x)
    inter = jnp.sum(s * t)
    dice = (2.0 * inter + 1.0) / (jnp.sum(s) + jnp.sum(t) + 1.0)
    return jnp.where(jnp.sum(t) == 0, jnp.where(jnp.sum(s) == 0, 1.0, 0.0), 1.0 - dice)


# ----------------------------------------------------------------------------
if __name__ == "__main__":
    key = jax.random.PRNGKey(0)
    k1, k2, k3, k4, k5 = jax.random.split(key, 5)
    B, C, H, W = 2, 3, 16, 16
    w = [0.33, 0.33, 0.33]

    # --- structure_loss ---
    pred = jax.random.normal(k1, (B, C, H, W), f32)
    mask = (jax.random.uniform(k2, (B, C, H, W)) > 0.5).astype(f32)
    loss_struct = jax.block_until_ready(Lossncriterion('structure_loss')(pred, mask))
    rwbce, rwiou = _structure_loss_ref(pred, mask)
    assert jnp.allclose(loss_struct, jnp.mean(rwbce) + jnp.mean(rwiou), rtol=2e-3, atol=2e-3)

    loss_struct_pc = jax.block_until_ready(
        Lossncriterion('structure_loss', per_channel=True)(pred, mask))
    wb, wi = jnp.mean(rwbce, 0), jnp.mean(rwiou, 0)
    ref_pc = (wb[0] * w[0] + wb[1] * w[1] + wb[2] * w[2]
              + wi[0] * w[0] + wi[1] * w[1] + wi[2] * w[2])
    assert jnp.allclose(loss_struct_pc, ref_pc, rtol=2e-3, atol=2e-3)

    # --- negloss ---
    N = 2
    heat_pred = jax.random.normal(k3, (N, B, C, H, W), f32)
    u = jax.random.uniform(k4, (B, C, H, W))
    gt = jnp.where(u > 0.95, 1.0, u * 0.9).astype(f32)   # heatmap-like with exact 1.0 peaks
    loss_neg = jax.block_until_ready(Lossncriterion('negloss')(heat_pred, gt))
    assert jnp.allclose(loss_neg, _neg_loss_ref(heat_pred, gt), rtol=2e-3, atol=2e-3)

    # --- dice_loss ---
    d_in = jax.random.normal(k5, (B, C, H, W), f32)
    loss_dice = jax.block_until_ready(Lossncriterion('dice_loss')(d_in, mask))
    assert jnp.allclose(loss_dice, _dice_loss_ref(d_in, mask), rtol=2e-3, atol=2e-3)

    # --- dice_loss, per_channel (indexes the first dim 0..2) ---
    d_in3 = jax.random.normal(k5, (3, C, H, W), f32)
    t3 = (jax.random.uniform(k2, (3, C, H, W)) > 0.5).astype(f32)
    loss_dice_pc = jax.block_until_ready(
        Lossncriterion('dice_loss', per_channel=True)(d_in3, t3))
    ref_dice_pc = sum(_dice_loss_ref(d_in3[i], t3[i]) * w[i] for i in range(3))
    assert jnp.allclose(loss_dice_pc, ref_dice_pc, rtol=2e-3, atol=2e-3)

    print("KERNEL_OK")
</pallas_src>

<mosaic_0001>
module attributes {stable_mosaic.version = 11 : i64} {
  func.func @_structure_kernel(%arg0: i32, %arg1: i32, %arg2: memref<1x1x16x16xf32, #tpu.memory_space<vmem>>, %arg3: memref<1x1x16x16xf32, #tpu.memory_space<vmem>>, %arg4: memref<16x16xbf16, #tpu.memory_space<vmem>>, %arg5: memref<16x16xbf16, #tpu.memory_space<vmem>>, %arg6: memref<1x1x1x1xf32, #tpu.memory_space<vmem>>, %arg7: memref<1x1x1x1xf32, #tpu.memory_space<vmem>>) attributes {dimension_semantics = [#tpu.dimension_semantics<parallel>, #tpu.dimension_semantics<parallel>], iteration_bounds = array<i64: 2, 3>, scalar_prefetch = 0 : i64, scratch_operands = 0 : i64, tpu.core_type = #tpu.core_type<tc>, window_params = [{transform_indices = @transform_0, window_bounds = array<i64: 1, 1, 16, 16>}, {transform_indices = @transform_1, window_bounds = array<i64: 1, 1, 16, 16>}, {pipeline_mode = #tpu.pipeline_mode<synchronous>, transform_indices = @transform_2, window_bounds = array<i64: 16, 16>}, {pipeline_mode = #tpu.pipeline_mode<synchronous>, transform_indices = @transform_3, window_bounds = array<i64: 16, 16>}, {transform_indices = @transform_4, window_bounds = array<i64: 1, 1, 1, 1>}, {transform_indices = @transform_5, window_bounds = array<i64: 1, 1, 1, 1>}]} {
    %c0 = arith.constant 0 : index
    %c0_0 = arith.constant 0 : index
    %c0_1 = arith.constant 0 : index
    %c0_2 = arith.constant 0 : index
    %0 = vector.load %arg2[%c0, %c0_0, %c0_1, %c0_2] : memref<1x1x16x16xf32, #tpu.memory_space<vmem>>, vector<1x1x16x16xf32>
    %1 = vector.shape_cast %0 : vector<1x1x16x16xf32> to vector<16x16xf32>
    %c0_3 = arith.constant 0 : index
    %c0_4 = arith.constant 0 : index
    %c0_5 = arith.constant 0 : index
    %c0_6 = arith.constant 0 : index
    %2 = vector.load %arg3[%c0_3, %c0_4, %c0_5, %c0_6] : memref<1x1x16x16xf32, #tpu.memory_space<vmem>>, vector<1x1x16x16xf32>
    %3 = vector.shape_cast %2 : vector<1x1x16x16xf32> to vector<16x16xf32>
    %4 = arith.truncf %3 : vector<16x16xf32> to vector<16x16xbf16>
    %c0_7 = arith.constant 0 : index
    %c0_8 = arith.constant 0 : index
    %5 = vector.load %arg5[%c0_7, %c0_8] : memref<16x16xbf16, #tpu.memory_space<vmem>>, vector<16x16xbf16>
    %cst = arith.constant dense<0.000000e+00> : vector<16x16xf32>
    %6 = tpu.matmul %4, %5, %cst {dimension_numbers = #tpu.dot_dimension_numbers<[1], [0], [0], [1], [0, 0, 1, 1], [], []>} : vector<16x16xbf16>, vector<16x16xbf16>, vector<16x16xf32> -> vector<16x16xf32>
    %c0_9 = arith.constant 0 : index
    %c0_10 = arith.constant 0 : index
    %7 = vector.load %arg4[%c0_9, %c0_10] : memref<16x16xbf16, #tpu.memory_space<vmem>>, vector<16x16xbf16>
    %8 = arith.truncf %6 : vector<16x16xf32> to vector<16x16xbf16>
    %cst_11 = arith.constant dense<0.000000e+00> : vector<16x16xf32>
    %9 = tpu.matmul %7, %8, %cst_11 {dimension_numbers = #tpu.dot_dimension_numbers<[1], [0], [0], [1], [0, 0, 1, 1], [], []>} : vector<16x16xbf16>, vector<16x16xbf16>, vector<16x16xf32> -> vector<16x16xf32>
    %cst_12 = arith.constant 0.00104058278 : f32
    %10 = vector.broadcast %cst_12 : f32 to vector<16x16xf32>
    %11 = arith.mulf %9, %10 : vector<16x16xf32>
    %12 = arith.subf %11, %3 : vector<16x16xf32>
    %13 = math.absf %12 : vector<16x16xf32>
    %cst_13 = arith.constant 5.000000e+00 : f32
    %14 = vector.broadcast %cst_13 : f32 to vector<16x16xf32>
    %15 = arith.mulf %14, %13 : vector<16x16xf32>
    %cst_14 = arith.constant 1.000000e+00 : f32
    %16 = vector.broadcast %cst_14 : f32 to vector<16x16xf32>
    %17 = arith.addf %16, %15 : vector<16x16xf32>
    %cst_15 = arith.constant 0.000000e+00 : f32
    %18 = vector.broadcast %cst_15 : f32 to vector<16x16xf32>
    %19 = arith.maximumf %1, %18 : vector<16x16xf32>
    %20 = arith.mulf %1, %3 : vector<16x16xf32>
    %21 = arith.subf %19, %20 : vector<16x16xf32>
    %22 = math.absf %1 : vector<16x16xf32>
    %cst_16 = arith.constant 0.000000e+00 : f32
    %23 = vector.broadcast %cst_16 : f32 to vector<16x16xf32>
    %24 = arith.subf %23, %22 : vector<16x16xf32>
    %25 = math.exp %24 : vector<16x16xf32>
    %cst_17 = arith.constant 1.000000e+00 : f32
    %26 = vector.broadcast %cst_17 : f32 to vector<16x16xf32>
    %27 = arith.addf %26, %25 : vector<16x16xf32>
    %28 = math.log %27 : vector<16x16xf32>
    %29 = arith.addf %21, %28 : vector<16x16xf32>
    %cst_18 = arith.constant 5.000000e-01 : f32
    %30 = vector.broadcast %cst_18 : f32 to vector<16x16xf32>
    %31 = arith.mulf %30, %1 : vector<16x16xf32>
    %32 = math.tanh %31 : vector<16x16xf32>
    %cst_19 = arith.constant 1.000000e+00 : f32
    %33 = vector.broadcast %cst_19 : f32 to vector<16x16xf32>
    %34 = arith.addf %32, %33 : vector<16x16xf32>
    %cst_20 = arith.constant 5.000000e-01 : f32
    %35 = vector.broadcast %cst_20 : f32 to vector<16x16xf32>
    %36 = arith.mulf %35, %34 : vector<16x16xf32>
    %37 = arith.mulf %17, %29 : vector<16x16xf32>
    %38 = vector.shape_cast %37 : vector<16x16xf32> to vector<1x16x16xf32>
    %cst_21 = arith.constant dense<0.000000e+00> : vector<1xf32>
    %39 = vector.multi_reduction <add>, %38, %cst_21 [1, 2] : vector<1x16x16xf32> to vector<1xf32>
    %40 = vector.shape_cast %39 : vector<1xf32> to vector<1x1x1xf32>
    %41 = vector.extract %40[0, 0, 0] : f32 from vector<1x1x1xf32>
    %42 = vector.shape_cast %17 : vector<16x16xf32> to vector<1x16x16xf32>
    %cst_22 = arith.constant dense<0.000000e+00> : vector<1xf32>
    %43 = vector.multi_reduction <add>, %42, %cst_22 [1, 2] : vector<1x16x16xf32> to vector<1xf32>
    %44 = vector.shape_cast %43 : vector<1xf32> to vector<1x1x1xf32>
    %45 = vector.extract %44[0, 0, 0] : f32 from vector<1x1x1xf32>
    %46 = arith.mulf %36, %3 : vector<16x16xf32>
    %47 = arith.mulf %46, %17 : vector<16x16xf32>
    %48 = vector.shape_cast %47 : vector<16x16xf32> to vector<1x16x16xf32>
    %cst_23 = arith.constant dense<0.000000e+00> : vector<1xf32>
    %49 = vector.multi_reduction <add>, %48, %cst_23 [1, 2] : vector<1x16x16xf32> to vector<1xf32>
    %50 = vector.shape_cast %49 : vector<1xf32> to vector<1x1x1xf32>
    %51 = vector.extract %50[0, 0, 0] : f32 from vector<1x1x1xf32>
    %52 = arith.addf %36, %3 : vector<16x16xf32>
    %53 = arith.mulf %52, %17 : vector<16x16xf32>
    %54 = vector.shape_cast %53 : vector<16x16xf32> to vector<1x16x16xf32>
    %cst_24 = arith.constant dense<0.000000e+00> : vector<1xf32>
    %55 = vector.multi_reduction <add>, %54, %cst_24 [1, 2] : vector<1x16x16xf32> to vector<1xf32>
    %56 = vector.shape_cast %55 : vector<1xf32> to vector<1x1x1xf32>
    %57 = vector.extract %56[0, 0, 0] : f32 from vector<1x1x1xf32>
    %58 = arith.divf %41, %45 : f32
    %59 = vector.broadcast %58 : f32 to vector<1x1x1x1xf32>
    %c0_25 = arith.constant 0 : index
    %c0_26 = arith.constant 0 : index
    %c0_27 = arith.constant 0 : index
    %c0_28 = arith.constant 0 : index
    %60 = vector.load %arg6[%c0_25, %c0_26, %c0_27, %c0_28] : memref<1x1x1x1xf32, #tpu.memory_space<vmem>>, vector<1x1x1x1xf32>
    tpu.vector_store %arg6[%c0_25, %c0_26, %c0_27, %c0_28], %59 {strides = array<i32>} : memref<1x1x1x1xf32, #tpu.memory_space<vmem>>, vector<1x1x1x1xf32>,
    %cst_29 = arith.constant 1.000000e+00 : f32
    %61 = arith.addf %51, %cst_29 : f32
    %62 = arith.subf %57, %51 : f32
    %cst_30 = arith.constant 1.000000e+00 : f32
    %63 = arith.addf %62, %cst_30 : f32
    %64 = arith.divf %61, %63 : f32
    %cst_31 = arith.constant 1.000000e+00 : f32
    %65 = arith.subf %cst_31, %64 : f32
    %66 = vector.broadcast %65 : f32 to vector<1x1x1x1xf32>
    %c0_32 = arith.constant 0 : index
    %c0_33 = arith.constant 0 : index
    %c0_34 = arith.constant 0 : index
    %c0_35 = arith.constant 0 : index
    %67 = vector.load %arg7[%c0_32, %c0_33, %c0_34, %c0_35] : memref<1x1x1x1xf32, #tpu.memory_space<vmem>>, vector<1x1x1x1xf32>
    tpu.vector_store %arg7[%c0_32, %c0_33, %c0_34, %c0_35], %66 {strides = array<i32>} : memref<1x1x1x1xf32, #tpu.memory_space<vmem>>, vector<1x1x1x1xf32>,
    return
  }
  func.func @transform_0(%arg0: i32, %arg1: i32) -> (i32, i32, i32, i32) {
    %c0_i32 = arith.constant 0 : i32
    %c0_i32_0 = arith.constant 0 : i32
    %c0_i32_1 = arith.constant 0 : i32
    return %arg0, %arg1, %c0_i32, %c0_i32_0 : i32, i32, i32, i32
  }
  func.func @transform_1(%arg0: i32, %arg1: i32) -> (i32, i32, i32, i32) {
    %c0_i32 = arith.constant 0 : i32
    %c0_i32_0 = arith.constant 0 : i32
    %c0_i32_1 = arith.constant 0 : i32
    return %arg0, %arg1, %c0_i32, %c0_i32_0 : i32, i32, i32, i32
  }
  func.func @transform_2(%arg0: i32, %arg1: i32) -> (i32, i32) {
    %c0_i32 = arith.constant 0 : i32
    %c0_i32_0 = arith.constant 0 : i32
    %c0_i32_1 = arith.constant 0 : i32
    return %c0_i32, %c0_i32_0 : i32, i32
  }
  func.func @transform_3(%arg0: i32, %arg1: i32) -> (i32, i32) {
    %c0_i32 = arith.constant 0 : i32
    %c0_i32_0 = arith.constant 0 : i32
    %c0_i32_1 = arith.constant 0 : i32
    return %c0_i32, %c0_i32_0 : i32, i32
  }
  func.func @transform_4(%arg0: i32, %arg1: i32) -> (i32, i32, i32, i32) {
    %c0_i32 = arith.constant 0 : i32
    %c0_i32_0 = arith.constant 0 : i32
    %c0_i32_1 = arith.constant 0 : i32
    return %arg0, %arg1, %c0_i32, %c0_i32_0 : i32, i32, i32, i32
  }
  func.func @transform_5(%arg0: i32, %arg1: i32) -> (i32, i32, i32, i32) {
    %c0_i32 = arith.constant 0 : i32
    %c0_i32_0 = arith.constant 0 : i32
    %c0_i32_1 = arith.constant 0 : i32
    return %arg0, %arg1, %c0_i32, %c0_i32_0 : i32, i32, i32, i32
  }
}

</mosaic_0001>

<bundles_post_ra>
// kernel: tpu_custom_call.1
= control target key start
LH: loop header
LB: loop body
LE: loop exit
PB: predicated region body
PF: predicated region fallthrough
CT: control target
= control target key end

     0   :  { %s1381_s0 = inlined_call_operand.hbm [shape: f32[2,3,16,16], index: 0, kind: input, shape index: {}]   ;;  %s1382_s1 = inlined_call_operand.hbm [shape: f32[2,3,16,16], index: 1, kind: input, shape index: {}]   ;;  %s1383_s2 = inlined_call_operand.hbm [shape: bf16[16,16], index: 2, kind: input, shape index: {}]   ;;  %s1384_s3 = inlined_call_operand.vmem [shape: bf16[16,16], index: 3, kind: input, shape index: {}]   ;;  %s1385_s4 = inlined_call_operand.vmem [shape: f32[2,3,1,1], index: 4, kind: output, shape index: {0}]   ;;  %s1386_s5 = inlined_call_operand.vmem [shape: f32[2,3,1,1], index: 5, kind: output, shape index: {1}]  }
   0x1   :  { %1396 = sst [smem:[#allocation13_spill]] %s1381_s0 }
   0x2   :  { %1397 = sst [smem:[#allocation14_spill]] %s1383_s2 }
   0x3   :  { %11 = vsyncpa [#allocation3], 0 }
   0x4   :  { %13 = vsyncpa [#allocation3 + $0x1], 0 }
   0x5   :  { %14 = vsyncpa [#allocation5], 0 }
   0x6   :  { %16 = vsyncpa [#allocation5 + $0x1], 0  ;;  %s1101_s18 = smov 0   ;;  %s1103_s19 = smov 0  }
   0x7   :  { %s1105_s20 = smov 0   ;;  %s1107_s21 = smov 0  }
   0x8   :  { %s1109_s22 = smov 0   ;;  %s1111_s23 = smov 0  }
   0x9   :  { %s1113_s24 = smov 0   ;;  %s1115_s25 = smov 0  }
   0xa LB: > { %1398 = sst [smem:[#allocation10_spill]] %s1056_s24  ;;  %s1391_s26 = sadd.s32 4294967295, %s1060_s25   ;;  %s1060_s25 = sphi %s1115_s25, %s22_s25   ;;  %s1056_s24 = sphi %s1113_s24, %s1415_s24   ;;  %s1052_s23 = sphi %s1111_s23, %s1420_s23   ;;  %s1048_s22 = sphi %s1109_s22, %s1413_s22   ;;  %s1044_s21 = sphi %s1107_s21, %s1419_s21   ;;  %s1040_s20 = sphi %s1105_s20, %s1418_s20   ;;  %s1036_s19 = sphi %s1103_s19, %s1417_s19   ;;  %s1032_s18 = sphi %s1101_s18, %s1416_s18  }
   0xb   : > { %p56_p0 = scmp.ne.s32.totalorder %s1036_s19, %s1032_s18  ;;  %p1143_p1 = scmp.eq.s32.totalorder %s1391_s26, 0 }
   0xc   : > { %p737_p2 = scmp.ge.s32.totalorder %s1060_s25, 1  ;;  %p193_p3 = scmp.lt.s32.totalorder %s1060_s25, 7 }
   0xd   : > { %s1399_s27 = scalar_select %p1143_p1, 1, 0 }
   0xe   : > { %p1151_p4 = por %p1143_p1, %p56_p0  ;;  %p1155_p5 = pnand %p737_p2, %p193_p3 }
   0xf   : > { %s1062_s30 = smov [#allocation6]   ;;  %s1403_s2 = sld [smem:[#allocation14_spill]] }
  0x10   : > { %s1400_s28 = scalar_select %p1151_p4, 1, 0 }
  0x11   : > { %s1401_s29 = scalar_select %p1155_p5, 1, 0 }
  0x12   : > { %s205_s6 = sshll.u32 %s1062_s30, 4  ;;  %p795_p6 = pneg %p1155_p5  ;;  %s206_s6 = int_to_ptr.vmem [resolvable:$true] %s205_s6 }
  0x14   : > { %p1163_p7 = pnand %p795_p6, %p1143_p1 }
  0x15   : > { %s898_s10 = scalar_lea.hbm %s1403_s2, 128 }
  0x16   : > { %p899_p8 = scmp.ne.s32.totalorder %s1403_s2, %s898_s10  ;;  %p900_p9 = pneg %p1163_p7 }
  0x17   : > { %p905_p12 = scmp.lt.u32.totalorder %s898_s10, %s1403_s2 }
  0x18   : > { %p901_p10 = pnand %p900_p9, %p899_p8 }
  0x1a   : > { %p902_p11 = pneg %p901_p10 }
  0x1c   : > { %p907_p13 = pnand %p905_p12, %p902_p11 }
  0x1e   : > { %910 = shalt.err (!%p907_p13)
}
  0x1f   : > { %s911_s15 = scalar_lea.vmem %s206_s6, 128  ;;  %p919_p6 = scmp.lt.s32.totalorder %s206_s6, %s206_s6 }
  0x20   : > { %p912_p0 = scmp.ne.s32.totalorder %s206_s6, %s911_s15  ;;  %p920_p1 = scmp.lt.s32.totalorder %s911_s15, %s911_s15 }
  0x22   : > { %p914_p2 = pnand %p912_p0, %p900_p9  ;;  %p921_p4 = por %p920_p1, %p919_p6 }
  0x24   : > { %p915_p3 = pneg %p914_p2 }
  0x26   : > { %p922_p5 = pnand %p921_p4, %p915_p3 }
  0x28   : > { %925 = shalt.err (!%p922_p5)
}
  0x29   : > { %s1063_s16 = smov 64   ;;  %s1064_s17 = smov 4  }
  0x2a   : > { %798 = dma.hbm_to_vmem [thread:$0]  (!%p1163_p7), %s1403_s2, 128, %s206_s6, [#allocation5], %s1063_s16, %s1063_s16, %s1064_s17  }
  0x2b   : > { %s31_s8 = sadd.s32 1, %s1052_s23  ;;  %s34_s9 = sadd.s32 1, %s1056_s24 }
  0x2c   : > { %p32_p1 = scmp.ge.s32.totalorder %s31_s8, 3  ;;  %s43_s10 = sadd.s32 1, %s1040_s20 }
  0x2d   : > { %p50_p4 = scmp.ne.s32.totalorder %s1040_s20, %s1036_s19  ;;  %p51_p5 = scmp.eq.s32.totalorder %s1060_s25, 0 }
  0x2e   : > { %s1422_s8 = smov (%p32_p1, %s31_s8), 0  ;;  %s1424_s9 = smov (!%p32_p1, %s34_s9), %s1056_s24 }
  0x2f   : > { %1404 = sst [smem:[#allocation11_spill]] %s1422_s8  ;;  %s39_s11 = ssub.s32 %s1052_s23, %s1422_s8 }
  0x30   : > { %p36_p8 = scmp.ge.s32.totalorder %s1424_s9, 2  ;;  %p807_p9 = scmp.lt.s32.totalorder %s1060_s25, 6 }
  0x31   : > { %p52_p10 = por %p51_p5, %p50_p4  ;;  %s222_s7 = sand.u32 1, %s1040_s20  }
  0x32   : > { %s1426_s9 = smov (%p36_p8, %s1424_s9), 0  ;;  %s1198_s6 = sshll.u32 %s222_s7, 4 }
  0x33   : > { %1405 = sst [smem:[#allocation12_spill]] %s1426_s9  ;;  %s38_s12 = ssub.s32 %s1056_s24, %s1426_s9 }
  0x34   : > { %s40_s13 = sor.u32 %s39_s11, %s38_s12  ;;  %s741_s14 = sshll.u32 %s1052_s23, 1 }
  0x35   : > { %p41_p7 = scmp.eq.s32.totalorder %s40_s13, 0  ;;  %s772_s15 = smul.u32 6, %s1056_s24 }
  0x36   : > { %s226_s16 = scalar_lea.vmem [#allocation2], %s1198_s6  ;;  %p1205_p11 = pnand %p807_p9, %p52_p10 }
  0x37   : > { %s235_s17 = sshll.u32 %s226_s16, 4  ;;  %s1212_s26 = sadd.s32 %s772_s15, %s741_s14  ;;  %s1214_s17 = int_to_ptr.vmem [resolvable:$true] %s235_s17 }
  0x38   : > { %s1210_s30 = scalar_select %p41_p7, %s1040_s20, %s43_s10  }
  0x39   : > { %s1392_s11 = sshll.u32 %s1212_s26, 7  ;;  %s1407_s0 = sld [smem:[#allocation13_spill]] }
  0x3a   : > { %s1224_s2 = scalar_lea.sflag [#allocation3], %s222_s7  ;;  %p928_p13 = pneg %p1205_p11 }
  0x3f   : > { %s1222_s16 = scalar_lea.hbm %s1407_s0, %s1392_s11  ;;  %s931_s12 = scalar_lea.hbm %s1407_s0, 1536 }
  0x40   : > { %s926_s10 = scalar_lea.hbm %s1222_s16, 256  ;;  %p932_p3 = scmp.lt.u32.totalorder %s1222_s16, %s1407_s0 }
  0x41   : > { %p927_p12 = scmp.ne.s32.totalorder %s1222_s16, %s926_s10  ;;  %p933_p6 = scmp.lt.u32.totalorder %s931_s12, %s926_s10 }
  0x42   : > { %p935_p4 = scmp.lt.u32.totalorder %s926_s10, %s1222_s16 }
  0x43   : > { %p929_p0 = pnand %p928_p13, %p927_p12  ;;  %p934_p1 = por %p933_p6, %p932_p3 }
  0x45   : > { %p930_p2 = pneg %p929_p0  ;;  %p936_p5 = por %p935_p4, %p934_p1 }
  0x47   : > { %p937_p8 = pnand %p936_p5, %p930_p2 }
  0x49   : > { %940 = shalt.err (!%p937_p8)
}
  0x4a   : > { %s941_s7 = scalar_lea.vmem %s1214_s17, 256  ;;  %s1065_s14 = smov [#allocation2]  }
  0x4b   : > { %p942_p9 = scmp.ne.s32.totalorder %s1214_s17, %s941_s7  ;;  %s946_s15 = sshll.u32 %s1065_s14, 4  ;;  %s947_s15 = int_to_ptr.vmem [resolvable:$false] %s946_s15 }
  0x4c   : > { %s948_s11 = scalar_lea.vmem %s947_s15, 512  ;;  %p949_p12 = scmp.lt.s32.totalorder %s1214_s17, %s947_s15 }
  0x4d   : > { %p944_p10 = pnand %p942_p9, %p928_p13  ;;  %p950_p0 = scmp.lt.s32.totalorder %s948_s11, %s941_s7 }
  0x4f   : > { %p945_p7 = pneg %p944_p10  ;;  %p951_p3 = por %p950_p0, %p949_p12 }
  0x51   : > { %p952_p6 = pnand %p951_p3, %p945_p7 }
  0x53   : > { %955 = shalt.err (!%p952_p6)
}
  0x54   : > { %s1066_s10 = smov 128   ;;  %s1067_s12 = smov 8  }
  0x55   : > { %802 = dma.hbm_to_vmem [thread:$0]  (!%p1205_p11), %s1222_s16, 256, %s1214_s17, %s1224_s2, %s1066_s10, %s1066_s10, %s1067_s12  }
  0x56   : > { %s1408_s13 = sshll.u32 %s1212_s26, 7  ;;  %s249_s11 = scalar_lea.vmem [#allocation4], %s1198_s6 }
  0x57   : > { %s1260_s15 = scalar_lea.hbm %s1382_s1, %s1408_s13  ;;  %s258_s0 = sshll.u32 %s249_s11, 4  ;;  %s1263_s0 = int_to_ptr.vmem [resolvable:$true] %s258_s0 }
  0x58   : > { %s245_s9 = sand.u32 1, %s1060_s25   ;;  %s956_s24 = scalar_lea.hbm %s1260_s15, 256 }
  0x59   : > { %s1266_s8 = scalar_lea.sflag [#allocation5], %s245_s9  ;;  %p957_p2 = scmp.ne.s32.totalorder %s1260_s15, %s956_s24 }
  0x5a   : > { %s961_s17 = scalar_lea.hbm %s1382_s1, 1536  ;;  %p962_p5 = scmp.lt.u32.totalorder %s1260_s15, %s1382_s1 }
  0x5b   : > { %p959_p1 = pnand %p957_p2, %p928_p13  ;;  %p963_p8 = scmp.lt.u32.totalorder %s961_s17, %s956_s24 }
  0x5c   : > { %p965_p10 = scmp.lt.u32.totalorder %s956_s24, %s1260_s15 }
  0x5d   : > { %p960_p4 = pneg %p959_p1  ;;  %p964_p9 = por %p963_p8, %p962_p5 }
  0x5f   : > { %p966_p7 = por %p965_p10, %p964_p9 }
  0x61   : > { %p967_p12 = pnand %p966_p7, %p960_p4 }
  0x63   : > { %970 = shalt.err (!%p967_p12)
}
  0x64   : > { %s971_s9 = scalar_lea.vmem %s1263_s0, 256  ;;  %s1068_s6 = smov [#allocation4]  }
  0x65   : > { %p972_p0 = scmp.ne.s32.totalorder %s1263_s0, %s971_s9  ;;  %s976_s7 = sshll.u32 %s1068_s6, 4  ;;  %s977_s7 = int_to_ptr.vmem [resolvable:$false] %s976_s7 }
  0x66   : > { %s978_s14 = scalar_lea.vmem %s977_s7, 512  ;;  %p979_p2 = scmp.lt.s32.totalorder %s1263_s0, %s977_s7 }
  0x67   : > { %p974_p3 = pnand %p972_p0, %p928_p13  ;;  %p980_p1 = scmp.lt.s32.totalorder %s978_s14, %s971_s9 }
  0x69   : > { %p975_p6 = pneg %p974_p3  ;;  %p981_p5 = por %p980_p1, %p979_p2 }
  0x6b   : > { %p982_p8 = pnand %p981_p5, %p975_p6 }
  0x6d   : > { %985 = shalt.err (!%p982_p8)
}
  0x6e   : > { %805 = dma.hbm_to_vmem [thread:$0]  (!%p1205_p11), %s1260_s15, 256, %s1263_s0, %s1266_s8, %s1066_s10, %s1066_s10, %s1067_s12  }
  0x6f   : > { %p1409_p13 = scmp.ne.s32.totalorder %s1401_s29, 0 }
  0x70   : > { %s272_s24 = sand.u32 (!%p1409_p13), 1, %s1036_s19   ;;  %p1410_p4 = scmp.ne.s32.totalorder (!%p1409_p13), %s1400_s28, 0 }
  0x71   : > { %270 = sbr.rel (%p1409_p13) target bundleno = 864 (0x360), region = 36  ;;  %s1298_s11 = sshll.u32 (!%p1409_p13), %s272_s24, 4 }
  0x72   : > { %s273_s2 = scalar_lea.sflag (!%p1409_p13), [#allocation3], %s272_s24  ;;  %s276_s26 = scalar_lea.vmem (!%p1409_p13), [#allocation2], %s1298_s11 }
  0x78   : > { %1019 = dma.done.wait (%p1410_p4), %s273_s2, 256  }
  0x79   : > { %1021 = vsyncadd (%p1410_p4), %s273_s2, 4294967040  ;;  %s1411_s18 = sadd.s32 4294967295, %s1060_s25   ;;  %s285_s8 = scalar_lea.vmem [#allocation4], %s1298_s11 }
  0x7a   : > { %s281_s0 = sand.u32 1, %s1411_s18  }
  0x7b   : > { %s282_s29 = scalar_lea.sflag [#allocation5], %s281_s0 }
  0x7c   : > { %1023 = dma.done.wait (%p1410_p4), %s282_s29, 256  }
  0x7d   : > { %1025 = vsyncadd (%p1410_p4), %s282_s29, 4294967040  ;;  %p1412_p11 = scmp.ne.s32.totalorder %s1399_s27, 0 }
  0x7f   : > { %1027 = dma.done.wait (%p1412_p11), [#allocation5], 128  }
  0x80   : > { %1029 = vsyncadd (%p1412_p11), [#allocation5], 4294967168  ;;  %v1069_v0 = vmov 0.0   ;;  %vm1070_vm0 = vmmov 0   ;;  %v880_v1 = vld [vmem:[%s1384_s3] sm:$0xff]   ;;  %v1321_v3 = vld [vmem:[%s285_s8 + $0x8] sm:$0xff] }
  0x81   : > { %760 = vmatprep.subr.bf16.mxu0 %v1069_v0  ;;  %762 = vmatprep.mubr.msk.bf16.mxu0 %vm1070_vm0, %v1069_v0  ;;  %v1319_v2 = vld [vmem:[%s285_s8] sm:$0xff]  ;;  %vm358_vm1 = vcmask 130048   ;;  %v346_v12 = vld [vmem:[%s276_s26 + $0x8] sm:$0xff]  ;;  %p330_p9 = scmp.lt.s32.totalorder %s1048_s22, 1  ;;  %p332_p10 = scmp.lt.s32.totalorder %s1044_s21, 2  ;;  %vm558_vm2 = vcmask 0  }
  0x82   : > { %766 = vmatprep.subr.bf16.mxu1 %v1069_v0  ;;  %768 = vmatprep.mubr.msk.bf16.mxu1 %vm1070_vm0, %v1069_v0  ;;  %v349_v4 = vpack.c.bf16 %v1321_v3, %v1319_v2  ;;  %v881_v10 = vld [vmem:[#allocation6] sm:$0xff]   ;;  %v472_v14 = vand.u32 2147483647, %v346_v12  ;;  %v488_v21 = vmul.f32 0.5, %v346_v12  ;;  %v466_v35 = vmax.f32 %v346_v12, 0.0 }
  0x83   : > { %761 = vmatpush3.bf16.msra.mxu0 %v880_v1  ;;  %v345_v11 = vld [vmem:[%s276_s26] sm:$0xff]  ;;  %v468_v36 = vmul.f32 %v1321_v3, %v346_v12  ;;  %s1428_s22 = smov (!%p330_p9, %s1048_s22), 1  ;;  %s1430_s21 = smov (!%p332_p10, %s1044_s21), 2 }
  0x84   : > { %v471_v13 = vand.u32 2147483647, %v345_v11  ;;  %v474_v16 = vsub.f32 0.0, %v472_v14  ;;  %v487_v19 = vmul.f32 0.5, %v345_v11  ;;  %v465_v28 = vmax.f32 %v345_v11, 0.0  ;;  %s774_s9 = smul.u32 3, %s1428_s22 }
  0x85   : > { %v467_v29 = vmul.f32 %v1319_v2, %v345_v11  ;;  %v470_v48 = vsub.f32 %v466_v35, %v468_v36 }
  0x86   : > { %763 = vmatmul.mubr.msk.bf16.vlgmr.msra.gmra.mrb[0].mxu0 %vm358_vm1, %v349_v4  ;;  %v473_v15 = vsub.f32 0.0, %v471_v13  ;;  %v477_v18 = vmul.f32 1.442695, %v474_v16  ;;  %s335_s6 = sadd.s32 %s774_s9, %s1430_s21 }
  0x87   : > { %v469_v43 = vsub.f32 %v465_v28, %v467_v29  ;;  %s336_s11 = scalar_lea.vmem %s1385_s4, %s335_s6  ;;  %s343_s10 = scalar_lea.vmem %s1386_s5, %s335_s6 }
  0x88   : > { %v475_v17 = vmul.f32 1.442695, %v473_v15 }
  0x8a   : > { %882 = vpow2.f32 %v475_v17 }
  0x8b   : > { %884 = vpow2.f32 %v477_v18 }
  0x8c   : > { %886 = vtanh.f32 %v487_v19 }
  0x8d   : > { %888 = vtanh.f32 %v488_v21 }
  0x94   : > { %v883_v20 = vpop.eup %882 }
  0x95   : > { %v885_v22 = vpop.eup %884  ;;  %v479_v23 = vadd.f32 1.0, %v883_v20 }
  0x96   : > { %v480_v24 = vadd.f32 1.0, %v885_v22  ;;  %v887_v25 = vpop.eup %886 }
  0x97   : > { %890 = vlog2.f32 %v479_v23  ;;  %v889_v26 = vpop.eup %888  ;;  %v491_v27 = vadd.f32 1.0, %v887_v25 }
  0x98   : > { %892 = vlog2.f32 %v480_v24  ;;  %v492_v32 = vadd.f32 1.0, %v889_v26 }
  0x99   : > { %v493_v39 = vmul.f32 0.5, %v491_v27 }
  0x9a   : > { %v494_v45 = vmul.f32 0.5, %v492_v32 }
  0x9b   : > { %v521_v52 = vmul.f32 %v493_v39, %v1319_v2  ;;  %v537_v54 = vadd.f32 %v493_v39, %v1319_v2 }
  0x9c   : > { %v522_v57 = vmul.f32 %v494_v45, %v1321_v3  ;;  %v538_v59 = vadd.f32 %v494_v45, %v1321_v3 }
  0xa1   : > { %v891_v30 = vpop.eup %890 }
  0xa2   : > { %v893_v37 = vpop.eup %892  ;;  %v482_v44 = vmul.f32 0.6931472, %v891_v30 }
  0xa3   : > { %v484_v49 = vmul.f32 0.6931472, %v893_v37 }
  0xa4   : > { %v485_v53 = vadd.f32 %v482_v44, %v469_v43 }
  0xa5   : > { %v486_v58 = vadd.f32 %v484_v49, %v470_v48 }
 0x159   : > { %v396_v5 = vpop.f32.mrb[0].mxu0 }
 0x15a   : > { %v764_v6 = vpop.f32.mrb[1].mxu0 }
 0x15b   : > { %v399_v7 = vpop.f32.mrb[2].mxu0 }
 0x15c   : > { %v405_v8 = vpack.c.bf16 %v399_v7, %v396_v5  ;;  %v765_v9 = vpop.f32.mrb[3].mxu0 }
 0x15e   : > { %767 = vmatpush3.bf16.msra.mxu1 %v405_v8 }
 0x161   : > { %769 = vmatmul.mubr.msk.bf16.vlgmr.msra.gmra.mrb[0].mxu1 %vm358_vm1, %v881_v10 }
 0x234   : > { %v448_v31 = vpop.f32.mrb[0].mxu1 }
 0x235   : > { %v455_v33 = vmul.f32 0.0010405828, %v448_v31  ;;  %v770_v34 = vpop.f32.mrb[1].mxu1 }
 0x236   : > { %v451_v38 = vpop.f32.mrb[2].mxu1 }
 0x237   : > { %v457_v40 = vsub.f32 %v455_v33, %v1319_v2  ;;  %v456_v41 = vmul.f32 0.0010405828, %v451_v38  ;;  %v771_v42 = vpop.f32.mrb[3].mxu1 }
 0x239   : > { %v459_v46 = vand.u32 2147483647, %v457_v40  ;;  %v458_v47 = vsub.f32 %v456_v41, %v1321_v3 }
 0x23b   : > { %v461_v50 = vmul.f32 5.0, %v459_v46  ;;  %v460_v51 = vand.u32 2147483647, %v458_v47 }
 0x23d   : > { %v463_v55 = vadd.f32 1.0, %v461_v50  ;;  %v462_v56 = vmul.f32 5.0, %v460_v51 }
 0x23f   : > { %v464_v60 = vadd.f32 1.0, %v462_v56  ;;  %v523_v61 = vmul.f32 %v521_v52, %v463_v55  ;;  %v495_v62 = vmul.f32 %v485_v53, %v463_v55  ;;  %v539_v63 = vmul.f32 %v537_v54, %v463_v55 }
 0x240   : > { %v509_v6 = vsel %vm358_vm1, %v463_v55, 0.0 }
 0x241   : > { %v524_v0 = vmul.f32 %v522_v57, %v464_v60  ;;  %v496_v1 = vmul.f32 %v486_v58, %v464_v60  ;;  %v525_v4 = vsel %vm358_vm1, %v523_v61, 0.0  ;;  %v540_v5 = vmul.f32 %v538_v59, %v464_v60 }
 0x242   : > { %v510_v2 = vsel %vm358_vm1, %v464_v60, 0.0  ;;  %v497_v8 = vsel %vm358_vm1, %v495_v62, 0.0  ;;  %v541_v12 = vsel %vm358_vm1, %v539_v63, 0.0 }
 0x243   : > { %v526_v7 = vsel %vm358_vm1, %v524_v0, 0.0  ;;  %v498_v9 = vsel %vm358_vm1, %v496_v1, 0.0  ;;  %v511_v3 = vadd.f32 %v510_v2, %v509_v6  ;;  %v542_v13 = vsel %vm358_vm1, %v540_v5, 0.0 }
 0x244   : > { %v527_v10 = vadd.f32 %v526_v7, %v525_v4  ;;  %v499_v11 = vadd.f32 %v498_v9, %v497_v8  ;;  %v543_v14 = vadd.f32 %v542_v13, %v541_v12 }
 0x246   : > { %528 = vadd.xlane.f32.xlu1 %v527_v10  ;;  %500 = vadd.xlane.f32.xlu0 %v499_v11 }
 0x24a   : > { %544 = vadd.xlane.f32.xlu1 %v543_v14  ;;  %512 = vadd.xlane.f32.xlu0 %v511_v3 }
 0x2d3   : > { %v529_v15 = vpop.xlane.xlu1 %528  ;;  %v501_v16 = vpop.xlane.xlu0 %500 }
 0x2d4   : > { %v530_v17 = vrot.slane %v529_v15, 4  ;;  %v502_v18 = vrot.slane %v501_v16, 4 }
 0x2d6   : > { %v531_v19 = vadd.f32 %v530_v17, %v529_v15  ;;  %v503_v20 = vadd.f32 %v502_v18, %v501_v16 }
 0x2d7   : > { %v545_v21 = vpop.xlane.xlu1 %544  ;;  %v513_v22 = vpop.xlane.xlu0 %512 }
 0x2d8   : > { %v532_v23 = vrot.slane %v531_v19, 2  ;;  %v504_v24 = vrot.slane %v503_v20, 2  ;;  %v546_v25 = vrot.slane %v545_v21, 4  ;;  %v514_v26 = vrot.slane %v513_v22, 4 }
 0x2da   : > { %v547_v27 = vadd.f32 %v546_v25, %v545_v21  ;;  %v515_v28 = vadd.f32 %v514_v26, %v513_v22  ;;  %v505_v29 = vadd.f32 %v504_v24, %v503_v20  ;;  %v533_v30 = vadd.f32 %v532_v23, %v531_v19 }
 0x2dc   : > { %v548_v31 = vrot.slane %v547_v27, 2  ;;  %v516_v32 = vrot.slane %v515_v28, 2  ;;  %v506_v33 = vrot.slane %v505_v29, 1  ;;  %v534_v37 = vrot.slane %v533_v30, 1 }
 0x2de   : > { %v549_v34 = vadd.f32 %v548_v31, %v547_v27  ;;  %v517_v35 = vadd.f32 %v516_v32, %v515_v28  ;;  %v507_v36 = vadd.f32 %v506_v33, %v505_v29  ;;  %v535_v42 = vadd.f32 %v534_v37, %v533_v30 }
 0x2e0   : > { %775 = vpush %v507_v36  ;;  %v518_v38 = vrot.slane %v517_v35, 1  ;;  %v550_v39 = vrot.slane %v549_v34, 1 }
 0x2e2   : > { %v519_v40 = vadd.f32 %v518_v38, %v517_v35  ;;  %v551_v41 = vadd.f32 %v550_v39, %v549_v34 }
 0x2e4   : > { %777 = vpush %v519_v40 }
 0x2e5   : > { %779 = vpush %v535_v42 }
 0x2e6   : > { %781 = vpush %v551_v41 }
 0x311   : > { %s776_s27 = spop %775 }
 0x315   : > { %s778_s28 = spop %777 }
 0x316   : > { %v553_v43 = vstv %s778_s28  ;;  %s780_s15 = spop %779 }
 0x317   : > { %894 = vrcp.f32 %v553_v43  ;;  %s782_s17 = spop %781  ;;  %s560_s26 = sadd.f32 1.0, %s780_s15 }
 0x318   : > { %s561_s16 = ssub.f32 %s782_s17, %s780_s15 }
 0x31a   : > { %s562_s13 = sadd.f32 1.0, %s561_s16 }
 0x31c   : > { %v563_v44 = vstv %s562_s13 }
 0x31d   : > { %896 = vrcp.f32 %v563_v44 }
 0x321   : > { %v895_v45 = vpop.eup %894 }
 0x322   : > { %783 = vpush %v895_v45 }
 0x327   : > { %v897_v46 = vpop.eup %896 }
 0x328   : > { %785 = vpush %v897_v46 }
 0x353   : > { %s784_s7 = spop %783 }
 0x354   : > { %s556_s2 = smul.f32 %s784_s7, %s776_s27 }
 0x356   : > { %v557_v47 = vstv %s556_s2 }
 0x357   : > { %559 = vst.msk [vmem:[%s336_s11] sm:$0x1] %vm558_vm2, %v557_v47 }
 0x359   : > { %s786_s18 = spop %785 }
 0x35a   : > { %s566_s0 = smul.f32 %s786_s18, %s560_s26 }
 0x35c   : > { %s567_s12 = ssub.f32 1.0, %s566_s0 }
 0x35e   : > { %v568_v48 = vstv %s567_s12 }
 0x35f   : > { %569 = vst.msk [vmem:[%s343_s10] sm:$0x1] %vm558_vm2, %v568_v48 }
 0x360 PF: > { %s22_s25 = sadd.s32 1, %s1060_s25   ;;  %s1413_s22 = sld [smem:[#allocation10_spill]] }
 0x361   : > { %p19_p7 = scmp.ge.s32.totalorder %s22_s25, 8   ;;  %s1414_s27 = sld [smem:[#allocation11_spill]] }
 0x362   : > { %s1415_s24 = sld [smem:[#allocation12_spill]]  ;;  %s1416_s18 = smov %s1036_s19 }
 0x363   : > { %s1417_s19 = smov %s1040_s20  ;;  %s1418_s20 = smov %s1210_s30 }
 0x364   : > { %s1419_s21 = smov %s1052_s23  ;;  %21 = sbr.rel (!%p19_p7) target bundleno = 10 (0xa), region = 105 }
 0x367   : > { %s1420_s23 = smov %s1414_s27 }
 0x36b   :  { %615 = vsyncpa [#allocation3], 1 }
 0x36c   :  { %617 = vsyncpa [#allocation3 + $0x1], 1 }
 0x36d   :  { %618 = vsyncpa [#allocation5], 1 }
 0x36e   :  { %620 = vsyncpa [#allocation5 + $0x1], 1 }

</bundles_post_ra>
